<compile_context>
chip_gen: v7x
topology: tpu7x:2x2x1
jax: 0.10.0
libtpu: 0.0.40
codegen_flags: <defaults>
</compile_context>

<pallas_src>
import jax
import jax.numpy as jnp
from jax.experimental import pallas as pl
from jax.experimental.pallas import tpu as pltpu


OUT_LANES = 128  # lane-dense output slab width


def _round_up(n, m):
    return ((n + m - 1) // m) * m


def critic_kernel(x_ref, w1_ref, b1_ref, w2_ref, b2_ref, w3_ref, b3_ref, q_ref):
    # fc1 + relu  (MXU matmul, f32 accumulate)
    h1 = jnp.dot(x_ref[...], w1_ref[...], preferred_element_type=jnp.float32)
    h1 = jnp.maximum(h1 + b1_ref[...], 0.0)
    # fc2 + relu
    h2 = jnp.dot(h1, w2_ref[...], preferred_element_type=jnp.float32)
    h2 = jnp.maximum(h2 + b2_ref[...], 0.0)
    # fc3 (out_features == 1): VPU multiply + cross-lane reduce instead of an
    # N=1 MXU matmul.  w3_ref is the (1, H) weight row; b3_ref is (1, 1).
    q = jnp.sum(h2 * w3_ref[...], axis=-1, keepdims=True) + b3_ref[...]
    # Lane-dense store: broadcast the scalar column across the 128-lane slab
    # so the store is an unmasked full-width vst.
    q_ref[...] = jnp.broadcast_to(q, q_ref.shape).astype(q_ref.dtype)


def critic_forward(x, padded_params, *, block_b=128):
    """x: [..., input_shape] float32.  Returns q: [..., 1] float32."""
    w1, b1, w2, b2, w3, b3 = padded_params
    IN_P, H_P = w1.shape

    lead_shape = x.shape[:-1]
    F = x.shape[-1]
    x2 = x.reshape(-1, F)
    B = x2.shape[0]

    # Batch tile: multiple of 8 (sublane), at most `block_b` (MXU-row friendly).
    TB = min(block_b, _round_up(B, 8))
    B_pad = _round_up(B, TB)
    nb = B_pad // TB

    # Zero-pad rows (batch) and columns (features) to the kernel layout; skip
    # the copy entirely when no padding is needed.
    if B_pad == B and F == IN_P:
        x_p = x2
    else:
        x_p = jnp.zeros((B_pad, IN_P), x2.dtype).at[:B, :F].set(x2)

    resident = lambda i: (0, 0)  # weights/biases: same block every grid step

    q_pad = pl.pallas_call(
        critic_kernel,
        out_shape=jax.ShapeDtypeStruct((B_pad, OUT_LANES), jnp.float32),
        grid=(nb,),
        in_specs=[
            pl.BlockSpec((TB, IN_P), lambda i: (i, 0)),   # x tile streams per step
            pl.BlockSpec((IN_P, H_P), resident),          # w1
            pl.BlockSpec((1, H_P), resident),             # b1
            pl.BlockSpec((H_P, H_P), resident),           # w2
            pl.BlockSpec((1, H_P), resident),             # b2
            pl.BlockSpec((1, H_P), resident),             # w3 (row layout)
            pl.BlockSpec((1, 1), resident),               # b3
        ],
        out_specs=pl.BlockSpec((TB, OUT_LANES), lambda i: (i, 0)),
        compiler_params=pltpu.CompilerParams(
            dimension_semantics=("parallel",)),
    )(x_p, w1, b1, w2, b2, w3, b3)

    q = q_pad[:B, :1]
    return q.reshape(*lead_shape, 1)


def init_critic_params(key, input_shape, critic_dim):
    """Deterministic init mimicking nn.Linear's uniform(-1/sqrt(fan_in), ...).
    Weights are returned already transposed to [in, out] for x @ W."""
    def linear(key, fan_in, fan_out):
        kw, kb = jax.random.split(key)
        bound = 1.0 / jnp.sqrt(fan_in)
        w = jax.random.uniform(kw, (fan_in, fan_out), jnp.float32, -bound, bound)
        b = jax.random.uniform(kb, (1, fan_out), jnp.float32, -bound, bound)
        return w, b

    k1, k2, k3 = jax.random.split(key, 3)
    w1, b1 = linear(k1, input_shape, critic_dim)
    w2, b2 = linear(k2, critic_dim, critic_dim)
    w3, b3 = linear(k3, critic_dim, 1)
    return (w1, b1, w2, b2, w3, b3)


def pad_params_for_kernel(params):
    """Zero-pad feature dims to multiples of 128; lay w3 out as a (1, H) row."""
    w1, b1, w2, b2, w3, b3 = params
    IN, H = w1.shape
    IN_P = _round_up(IN, 128)
    H_P = _round_up(H, 128)
    w1p = jnp.zeros((IN_P, H_P), jnp.float32).at[:IN, :H].set(w1)
    b1p = jnp.zeros((1, H_P), jnp.float32).at[:, :H].set(b1)
    w2p = jnp.zeros((H_P, H_P), jnp.float32).at[:H, :H].set(w2)
    b2p = jnp.zeros((1, H_P), jnp.float32).at[:, :H].set(b2)
    w3p = jnp.zeros((1, H_P), jnp.float32).at[:, :H].set(w3.reshape(1, H))
    b3p = b3.reshape(1, 1).astype(jnp.float32)
    return (w1p, b1p, w2p, b2p, w3p, b3p)


def critic_ref(x, params):
    """Pure-JAX reference (unpadded params) for correctness checking."""
    w1, b1, w2, b2, w3, b3 = params
    h1 = jnp.maximum(x @ w1 + b1, 0.0)
    h2 = jnp.maximum(h1 @ w2 + b2, 0.0)
    return h2 @ w3 + b3


if __name__ == "__main__":
    key = jax.random.PRNGKey(0)
    k_x, k_p = jax.random.split(key)

    batch = 8
    input_shape = 32     # flattened obs/state+action feature size
    critic_dim = 64      # args.critic_dim

    x = jax.random.normal(k_x, (batch, input_shape), jnp.float32)
    params = init_critic_params(k_p, input_shape, critic_dim)
    padded_params = pad_params_for_kernel(params)

    q = critic_forward(x, padded_params)
    q = jax.block_until_ready(q)

    q_ref = critic_ref(x, params)
    assert q.shape == (batch, 1), q.shape
    assert jnp.allclose(q, q_ref, atol=1e-5, rtol=1e-5), (
        f"mismatch: max abs err {jnp.max(jnp.abs(q - q_ref))}")

    print("KERNEL_OK")
</pallas_src>

<mosaic_0001>
module attributes {stable_mosaic.version = 11 : i64} {
  func.func @critic_kernel(%arg0: i32, %arg1: memref<8x128xf32, #tpu.memory_space<vmem>>, %arg2: memref<128x128xf32, #tpu.memory_space<vmem>>, %arg3: memref<1x128xf32, #tpu.memory_space<vmem>>, %arg4: memref<128x128xf32, #tpu.memory_space<vmem>>, %arg5: memref<1x128xf32, #tpu.memory_space<vmem>>, %arg6: memref<1x128xf32, #tpu.memory_space<vmem>>, %arg7: memref<1x1xf32, #tpu.memory_space<vmem>>, %arg8: memref<8x128xf32, #tpu.memory_space<vmem>>) attributes {dimension_semantics = [#tpu.dimension_semantics<parallel>], iteration_bounds = array<i64: 1>, scalar_prefetch = 0 : i64, scratch_operands = 0 : i64, tpu.core_type = #tpu.core_type<tc>, window_params = [{transform_indices = @transform_0, window_bounds = array<i64: 8, 128>}, {pipeline_mode = #tpu.pipeline_mode<synchronous>, transform_indices = @transform_1, window_bounds = array<i64: 128, 128>}, {pipeline_mode = #tpu.pipeline_mode<synchronous>, transform_indices = @transform_2, window_bounds = array<i64: 1, 128>}, {pipeline_mode = #tpu.pipeline_mode<synchronous>, transform_indices = @transform_3, window_bounds = array<i64: 128, 128>}, {pipeline_mode = #tpu.pipeline_mode<synchronous>, transform_indices = @transform_4, window_bounds = array<i64: 1, 128>}, {pipeline_mode = #tpu.pipeline_mode<synchronous>, transform_indices = @transform_5, window_bounds = array<i64: 1, 128>}, {pipeline_mode = #tpu.pipeline_mode<synchronous>, transform_indices = @transform_6, window_bounds = array<i64: 1, 1>}, {transform_indices = @transform_7, window_bounds = array<i64: 8, 128>}]} {
    %c0 = arith.constant 0 : index
    %c0_0 = arith.constant 0 : index
    %0 = vector.load %arg1[%c0, %c0_0] : memref<8x128xf32, #tpu.memory_space<vmem>>, vector<8x128xf32>
    %c0_1 = arith.constant 0 : index
    %c0_2 = arith.constant 0 : index
    %1 = vector.load %arg2[%c0_1, %c0_2] : memref<128x128xf32, #tpu.memory_space<vmem>>, vector<128x128xf32>
    %cst = arith.constant dense<0.000000e+00> : vector<8x128xf32>
    %2 = tpu.matmul %0, %1, %cst {dimension_numbers = #tpu.dot_dimension_numbers<[1], [0], [0], [1], [0, 0, 1, 1], [], []>} : vector<8x128xf32>, vector<128x128xf32>, vector<8x128xf32> -> vector<8x128xf32>
    %c0_3 = arith.constant 0 : index
    %c0_4 = arith.constant 0 : index
    %3 = vector.load %arg3[%c0_3, %c0_4] : memref<1x128xf32, #tpu.memory_space<vmem>>, vector<1x128xf32>
    %4 = vector.broadcast %3 : vector<1x128xf32> to vector<8x128xf32>
    %5 = arith.addf %2, %4 : vector<8x128xf32>
    %cst_5 = arith.constant 0.000000e+00 : f32
    %6 = vector.broadcast %cst_5 : f32 to vector<8x128xf32>
    %7 = arith.maximumf %5, %6 : vector<8x128xf32>
    %c0_6 = arith.constant 0 : index
    %c0_7 = arith.constant 0 : index
    %8 = vector.load %arg4[%c0_6, %c0_7] : memref<128x128xf32, #tpu.memory_space<vmem>>, vector<128x128xf32>
    %cst_8 = arith.constant dense<0.000000e+00> : vector<8x128xf32>
    %9 = tpu.matmul %7, %8, %cst_8 {dimension_numbers = #tpu.dot_dimension_numbers<[1], [0], [0], [1], [0, 0, 1, 1], [], []>} : vector<8x128xf32>, vector<128x128xf32>, vector<8x128xf32> -> vector<8x128xf32>
    %c0_9 = arith.constant 0 : index
    %c0_10 = arith.constant 0 : index
    %10 = vector.load %arg5[%c0_9, %c0_10] : memref<1x128xf32, #tpu.memory_space<vmem>>, vector<1x128xf32>
    %11 = vector.broadcast %10 : vector<1x128xf32> to vector<8x128xf32>
    %12 = arith.addf %9, %11 : vector<8x128xf32>
    %cst_11 = arith.constant 0.000000e+00 : f32
    %13 = vector.broadcast %cst_11 : f32 to vector<8x128xf32>
    %14 = arith.maximumf %12, %13 : vector<8x128xf32>
    %c0_12 = arith.constant 0 : index
    %c0_13 = arith.constant 0 : index
    %15 = vector.load %arg6[%c0_12, %c0_13] : memref<1x128xf32, #tpu.memory_space<vmem>>, vector<1x128xf32>
    %16 = vector.broadcast %15 : vector<1x128xf32> to vector<8x128xf32>
    %17 = arith.mulf %14, %16 : vector<8x128xf32>
    %cst_14 = arith.constant dense<0.000000e+00> : vector<8xf32>
    %18 = vector.multi_reduction <add>, %17, %cst_14 [1] : vector<8x128xf32> to vector<8xf32>
    %19 = vector.shape_cast %18 : vector<8xf32> to vector<8x1xf32>
    %c0_15 = arith.constant 0 : index
    %c0_16 = arith.constant 0 : index
    %20 = vector.load %arg7[%c0_15, %c0_16] : memref<1x1xf32, #tpu.memory_space<vmem>>, vector<1x1xf32>
    %21 = vector.broadcast %20 : vector<1x1xf32> to vector<8x1xf32>
    %22 = arith.addf %19, %21 : vector<8x1xf32>
    %23 = vector.shape_cast %22 : vector<8x1xf32> to vector<8x1xf32>
    %24 = vector.broadcast %23 : vector<8x1xf32> to vector<8x128xf32>
    %c0_17 = arith.constant 0 : index
    %c0_18 = arith.constant 0 : index
    %25 = vector.load %arg8[%c0_17, %c0_18] : memref<8x128xf32, #tpu.memory_space<vmem>>, vector<8x128xf32>
    tpu.vector_store %arg8[%c0_17, %c0_18], %24 {strides = array<i32>} : memref<8x128xf32, #tpu.memory_space<vmem>>, vector<8x128xf32>,
    return
  }
  func.func @transform_0(%arg0: i32) -> (i32, i32) {
    %c0_i32 = arith.constant 0 : i32
    %c0_i32_0 = arith.constant 0 : i32
    return %arg0, %c0_i32 : i32, i32
  }
  func.func @transform_1(%arg0: i32) -> (i32, i32) {
    %c0_i32 = arith.constant 0 : i32
    %c0_i32_0 = arith.constant 0 : i32
    %c0_i32_1 = arith.constant 0 : i32
    return %c0_i32, %c0_i32_0 : i32, i32
  }
  func.func @transform_2(%arg0: i32) -> (i32, i32) {
    %c0_i32 = arith.constant 0 : i32
    %c0_i32_0 = arith.constant 0 : i32
    %c0_i32_1 = arith.constant 0 : i32
    return %c0_i32, %c0_i32_0 : i32, i32
  }
  func.func @transform_3(%arg0: i32) -> (i32, i32) {
    %c0_i32 = arith.constant 0 : i32
    %c0_i32_0 = arith.constant 0 : i32
    %c0_i32_1 = arith.constant 0 : i32
    return %c0_i32, %c0_i32_0 : i32, i32
  }
  func.func @transform_4(%arg0: i32) -> (i32, i32) {
    %c0_i32 = arith.constant 0 : i32
    %c0_i32_0 = arith.constant 0 : i32
    %c0_i32_1 = arith.constant 0 : i32
    return %c0_i32, %c0_i32_0 : i32, i32
  }
  func.func @transform_5(%arg0: i32) -> (i32, i32) {
    %c0_i32 = arith.constant 0 : i32
    %c0_i32_0 = arith.constant 0 : i32
    %c0_i32_1 = arith.constant 0 : i32
    return %c0_i32, %c0_i32_0 : i32, i32
  }
  func.func @transform_6(%arg0: i32) -> (i32, i32) {
    %c0_i32 = arith.constant 0 : i32
    %c0_i32_0 = arith.constant 0 : i32
    %c0_i32_1 = arith.constant 0 : i32
    return %c0_i32, %c0_i32_0 : i32, i32
  }
  func.func @transform_7(%arg0: i32) -> (i32, i32) {
    %c0_i32 = arith.constant 0 : i32
    %c0_i32_0 = arith.constant 0 : i32
    return %arg0, %c0_i32 : i32, i32
  }
}

</mosaic_0001>

<bundles_post_ra>
// kernel: tpu_custom_call.1
= control target key start
LH: loop header
LB: loop body
LE: loop exit
PB: predicated region body
PF: predicated region fallthrough
CT: control target
= control target key end

     0   :  { %s690_s0 = inlined_call_operand.hbm [shape: f32[8,128], index: 0, kind: input, shape index: {}]   ;;  %s691_s1 = inlined_call_operand.hbm [shape: f32[128,128], index: 1, kind: input, shape index: {}]   ;;  %s692_s2 = inlined_call_operand.vmem [shape: f32[1,128], index: 2, kind: input, shape index: {}]   ;;  %s693_s3 = inlined_call_operand.hbm [shape: f32[128,128], index: 3, kind: input, shape index: {}]   ;;  %s694_s4 = inlined_call_operand.vmem [shape: f32[1,128], index: 4, kind: input, shape index: {}]   ;;  %s695_s5 = inlined_call_operand.vmem [shape: f32[1,128], index: 5, kind: input, shape index: {}]   ;;  %s696_s6 = inlined_call_operand.<no memory space> [shape: f32[1,1], index: 6, kind: input, shape index: {}]   ;;  %s697_s7 = inlined_call_operand.hbm [shape: f32[8,128], index: 7, kind: output, shape index: {}]  }
   0x1   :  { %v12_v0 = vstv %s696_s6 }
   0x2   :  { %13 = vst [vmem:[#allocation2] sm:$0x1] %v12_v0 }
   0x3   :  { %14 = vsyncpa [#allocation4], 0 }
   0x4   :  { %15 = vsyncpa [#allocation7], 0 }
   0x5   :  { %16 = vsyncpa [#allocation5], 0  ;;  %s558_s26 = smov [#allocation6]   ;;  %s464_s30 = scalar_lea.hbm %s691_s1, 2048 }
   0x6   :  { %s32_s27 = sshll.u32 %s558_s26, 4  ;;  %p465_p0 = scmp.ne.s32.totalorder %s691_s1, %s464_s30  ;;  %s33_s27 = int_to_ptr.vmem [resolvable:$true] %s32_s27 }
   0x7   :  { %p468_p1 = scmp.lt.u32.totalorder %s464_s30, %s691_s1 }
   0x9   :  { %p470_p2 = pnand %p468_p1, %p465_p0 }
   0xb   :  { %473 = shalt.err (!%p470_p2)
}
   0xc   :  { %s474_s6 = scalar_lea.vmem %s33_s27, 2048  ;;  %p479_p4 = scmp.lt.s32.totalorder %s33_s27, %s33_s27 }
   0xd   :  { %p475_p3 = scmp.ne.s32.totalorder %s33_s27, %s474_s6  ;;  %p480_p5 = scmp.lt.s32.totalorder %s474_s6, %s474_s6 }
   0xf   :  { %p481_p6 = por %p480_p5, %p479_p4 }
  0x11   :  { %p482_p7 = pnand %p481_p6, %p475_p3 }
  0x13   :  { %485 = shalt.err (!%p482_p7)
}
  0x14   :  { %s559_s12 = smov 128   ;;  %s560_s13 = smov 8  }
  0x15   :  { %38 = dma.hbm_to_vmem [thread:$0]  %s691_s1, 2048, %s33_s27, [#allocation7], %s559_s12, %s559_s12, %s560_s13  }
  0x16   :  { %s561_s16 = smov [#allocation3]   ;;  %s562_s18 = smov [#allocation8]  }
  0x17   :  { %s23_s17 = sshll.u32 %s561_s16, 4  ;;  %s46_s19 = sshll.u32 %s562_s18, 4  ;;  %s24_s17 = int_to_ptr.vmem [resolvable:$true] %s23_s17  ;;  %s47_s19 = int_to_ptr.vmem [resolvable:$true] %s46_s19 }
  0x18   :  { %s486_s22 = scalar_lea.hbm %s690_s0, 128 }
  0x19   :  { %p487_p8 = scmp.ne.s32.totalorder %s690_s0, %s486_s22  ;;  %p490_p9 = scmp.lt.u32.totalorder %s486_s22, %s690_s0 }
  0x1b   :  { %p492_p10 = pnand %p490_p9, %p487_p8 }
  0x1d   :  { %495 = shalt.err (!%p492_p10)
}
  0x1e   :  { %s496_s1 = scalar_lea.vmem %s24_s17, 128  ;;  %p501_p12 = scmp.lt.s32.totalorder %s24_s17, %s24_s17 }
  0x1f   :  { %p497_p11 = scmp.ne.s32.totalorder %s24_s17, %s496_s1  ;;  %p502_p13 = scmp.lt.s32.totalorder %s496_s1, %s496_s1 }
  0x21   :  { %p503_p0 = por %p502_p13, %p501_p12 }
  0x23   :  { %p504_p1 = pnand %p503_p0, %p497_p11 }
  0x25   :  { %507 = shalt.err (!%p504_p1)
}
  0x26   :  { %26 = dma.hbm_to_vmem [thread:$0]  %s690_s0, 128, %s24_s17, [#allocation4]  }
  0x27   :  { %s508_s8 = scalar_lea.hbm %s693_s3, 2048 }
  0x28   :  { %p509_p2 = scmp.ne.s32.totalorder %s693_s3, %s508_s8  ;;  %p512_p3 = scmp.lt.u32.totalorder %s508_s8, %s693_s3 }
  0x2a   :  { %p514_p4 = pnand %p512_p3, %p509_p2 }
  0x2c   :  { %517 = shalt.err (!%p514_p4)
}
  0x2d   :  { %s518_s14 = scalar_lea.vmem %s47_s19, 2048  ;;  %p523_p6 = scmp.lt.s32.totalorder %s47_s19, %s47_s19 }
  0x2e   :  { %p519_p5 = scmp.ne.s32.totalorder %s47_s19, %s518_s14  ;;  %p524_p7 = scmp.lt.s32.totalorder %s518_s14, %s518_s14 }
  0x30   :  { %p525_p8 = por %p524_p7, %p523_p6 }
  0x32   :  { %p526_p9 = pnand %p525_p8, %p519_p5 }
  0x34   :  { %529 = shalt.err (!%p526_p9)
}
  0x35   :  { %52 = dma.hbm_to_vmem [thread:$0]  %s693_s3, 2048, %s47_s19, [#allocation7], %s559_s12, %s559_s12, %s560_s13  }
  0x36   :  { %552 = dma.done.wait [#allocation4], 128  }
  0x37   :  { %553 = vsyncadd [#allocation4], 4294967168 }
  0x38   :  { %554 = dma.done.wait [#allocation7], 4096  }
  0x39   :  { %555 = vsyncadd [#allocation7], 4294963200  ;;  %v563_v1 = vmov 0.0|0.0   ;;  %vm564_vm0 = vmmov 0   ;;  %v565_v2 = vmov 0.0   ;;  %v69_v3 = vld [vmem:[#allocation6] sm:$0xff] }
  0x3a   :  { %405 = vmatprep.subr.bf16.mxu0 %v563_v1  ;;  %367 = vmatprep.mubr.msk.f32.mxu0 %vm564_vm0, %v565_v2  ;;  %v70_v4 = vld [vmem:[#allocation6 + $0x8] sm:$0xff]  ;;  %v71_v5 = vld [vmem:[#allocation6 + $0x10] sm:$0xff]  ;;  %v72_v7 = vld [vmem:[#allocation6 + $0x18] sm:$0xff]  ;;  %v566_v0 = vmov 0  }
  0x3b   :  { %429 = vmatprep.subr.bf16.mxu1 %v563_v1  ;;  %402 = vmatprep.mubr.msk.f32.mxu1 %vm564_vm0, %v565_v2  ;;  %v406_v6 = vpack.c.bf16 %v70_v4, %v69_v3  ;;  %v409_v8 = vpack.c.bf16 %v72_v7, %v71_v5  ;;  %v73_v9 = vld [vmem:[#allocation6 + $0x20] sm:$0xff]  ;;  %v74_v10 = vld [vmem:[#allocation6 + $0x28] sm:$0xff]  ;;  %v165_v13 = vld [vmem:[#allocation8 + $0x10] sm:$0xff] }
  0x3c   :  { %v163_v11 = vld [vmem:[#allocation8] sm:$0xff]  ;;  %v164_v12 = vld [vmem:[#allocation8 + $0x8] sm:$0xff]  ;;  %v166_v14 = vld [vmem:[#allocation8 + $0x18] sm:$0xff]  ;;  %v412_v15 = vpack.c.bf16 %v74_v10, %v73_v9  ;;  %463 = vset.pattern.permute.xlu0 %v566_v0 }
  0x3d   :  { %407 = vmatpush3.bf16.msra.mxu0 %v406_v6  ;;  %v430_v16 = vpack.c.bf16 %v164_v12, %v163_v11  ;;  %v75_v17 = vld [vmem:[#allocation6 + $0x30] sm:$0xff]  ;;  %v76_v18 = vld [vmem:[#allocation6 + $0x38] sm:$0xff]  ;;  %v433_v19 = vpack.c.bf16 %v166_v14, %v165_v13  ;;  %v167_v20 = vld [vmem:[#allocation8 + $0x20] sm:$0xff] }
  0x3e   :  { %408 = vmatprep.subr.bf16.mxu0 %v563_v1  ;;  %v168_v21 = vld [vmem:[#allocation8 + $0x28] sm:$0xff]  ;;  %v415_v22 = vpack.c.bf16 %v76_v18, %v75_v17  ;;  %v77_v23 = vld [vmem:[#allocation6 + $0x40] sm:$0xff]  ;;  %v169_v26 = vld [vmem:[#allocation8 + $0x30] sm:$0xff] }
  0x3f   :  { %431 = vmatpush3.bf16.msra.mxu1 %v430_v16  ;;  %v78_v24 = vld [vmem:[#allocation6 + $0x48] sm:$0xff]  ;;  %v436_v25 = vpack.c.bf16 %v168_v21, %v167_v20  ;;  %v170_v27 = vld [vmem:[#allocation8 + $0x38] sm:$0xff]  ;;  %v79_v29 = vld [vmem:[#allocation6 + $0x50] sm:$0xff] }
  0x40   :  { %432 = vmatprep.subr.bf16.mxu1 %v563_v1  ;;  %v418_v28 = vpack.c.bf16 %v78_v24, %v77_v23  ;;  %v80_v30 = vld [vmem:[#allocation6 + $0x58] sm:$0xff]  ;;  %v439_v31 = vpack.c.bf16 %v170_v27, %v169_v26  ;;  %v171_v32 = vld [vmem:[#allocation8 + $0x40] sm:$0xff]  ;;  %v172_v33 = vld [vmem:[#allocation8 + $0x48] sm:$0xff] }
  0x41   :  { %410 = vmatpush3.bf16.msra.mxu0 %v409_v8  ;;  %v421_v34 = vpack.c.bf16 %v80_v30, %v79_v29  ;;  %v81_v35 = vld [vmem:[#allocation6 + $0x60] sm:$0xff]  ;;  %v82_v36 = vld [vmem:[#allocation6 + $0x68] sm:$0xff]  ;;  %v442_v37 = vpack.c.bf16 %v172_v33, %v171_v32  ;;  %v173_v38 = vld [vmem:[#allocation8 + $0x50] sm:$0xff] }
  0x42   :  { %411 = vmatprep.subr.bf16.mxu0 %v563_v1  ;;  %v174_v39 = vld [vmem:[#allocation8 + $0x58] sm:$0xff]  ;;  %v424_v40 = vpack.c.bf16 %v82_v36, %v81_v35  ;;  %v83_v41 = vld [vmem:[#allocation6 + $0x70] sm:$0xff]  ;;  %v175_v44 = vld [vmem:[#allocation8 + $0x60] sm:$0xff] }
  0x43   :  { %434 = vmatpush3.bf16.msra.mxu1 %v433_v19  ;;  %v84_v42 = vld [vmem:[#allocation6 + $0x78] sm:$0xff]  ;;  %v445_v43 = vpack.c.bf16 %v174_v39, %v173_v38  ;;  %v176_v45 = vld [vmem:[#allocation8 + $0x68] sm:$0xff]  ;;  %v177_v49 = vld [vmem:[#allocation8 + $0x70] sm:$0xff] }
  0x44   :  { %435 = vmatprep.subr.bf16.mxu1 %v563_v1  ;;  %v427_v46 = vpack.c.bf16 %v84_v42, %v83_v41  ;;  %v448_v47 = vpack.c.bf16 %v176_v45, %v175_v44  ;;  %v68_v48 = vld [vmem:[#allocation3] sm:$0xff]  ;;  %v297_v52 = vld [vmem:[%s692_s2] ss:$0 sm:$0xff]  ;;  %s567_s2 = smov [#allocation9]  }
  0x45   :  { %413 = vmatpush3.bf16.msra.mxu0 %v412_v15  ;;  %v178_v50 = vld [vmem:[#allocation8 + $0x78] sm:$0xff]  ;;  %v298_v57 = vld [vmem:[%s694_s4] ss:$0 sm:$0xff]  ;;  %s287_s19 = sshll.u32 %s567_s2, 4  ;;  %s288_s19 = int_to_ptr.vmem [resolvable:$true] %s287_s19 }
  0x46   :  { %414 = vmatprep.subr.bf16.mxu0 %v563_v1  ;;  %v451_v51 = vpack.c.bf16 %v178_v50, %v177_v49  ;;  %v299_v61 = vld [vmem:[%s695_s5] ss:$0 sm:$0xff]  ;;  %s530_s4 = scalar_lea.vmem %s288_s19, 128  ;;  %p535_p11 = scmp.lt.s32.totalorder %s288_s19, %s288_s19 }
  0x47   :  { %437 = vmatpush3.bf16.msra.mxu1 %v436_v25  ;;  %p531_p10 = scmp.ne.s32.totalorder %s288_s19, %s530_s4  ;;  %p536_p12 = scmp.lt.s32.totalorder %s530_s4, %s530_s4 }
  0x48   :  { %438 = vmatprep.subr.bf16.mxu1 %v563_v1 }
  0x49   :  { %416 = vmatpush3.bf16.msra.mxu0 %v415_v22  ;;  %p537_p13 = por %p536_p12, %p535_p11 }
  0x4a   :  { %417 = vmatprep.subr.bf16.mxu0 %v563_v1 }
  0x4b   :  { %440 = vmatpush3.bf16.msra.mxu1 %v439_v31  ;;  %p538_p0 = pnand %p537_p13, %p531_p10 }
  0x4c   :  { %441 = vmatprep.subr.bf16.mxu1 %v563_v1 }
  0x4d   :  { %419 = vmatpush3.bf16.msra.mxu0 %v418_v28 }
  0x4e   :  { %420 = vmatprep.subr.bf16.mxu0 %v563_v1 }
  0x4f   :  { %443 = vmatpush3.bf16.msra.mxu1 %v442_v37 }
  0x50   :  { %444 = vmatprep.subr.bf16.mxu1 %v563_v1 }
  0x51   :  { %422 = vmatpush3.bf16.msra.mxu0 %v421_v34 }
  0x52   :  { %423 = vmatprep.subr.bf16.mxu0 %v563_v1 }
  0x53   :  { %446 = vmatpush3.bf16.msra.mxu1 %v445_v43 }
  0x54   :  { %447 = vmatprep.subr.bf16.mxu1 %v563_v1 }
  0x55   :  { %425 = vmatpush3.bf16.msra.mxu0 %v424_v40 }
  0x56   :  { %426 = vmatprep.subr.bf16.mxu0 %v563_v1 }
  0x57   :  { %449 = vmatpush3.bf16.msra.mxu1 %v448_v47 }
  0x58   :  { %450 = vmatprep.subr.bf16.mxu1 %v563_v1  ;;  %v300_v1 = vld [vmem:[#allocation2] ss:$0 sm:$0xff] }
  0x59   :  { %428 = vmatpush3.bf16.msra.mxu0 %v427_v46 }
  0x5b   :  { %452 = vmatpush3.bf16.msra.mxu1 %v451_v51 }
  0x5c   :  { %368 = vmatmul.mubr.f32.vlgmr.msra.gmra.mrb[0].mxu0 %v68_v48 }
 0x12f   :  { %v158_v53 = vpop.f32.mrb[0].mxu0 }
 0x130   :  { %v159_v54 = vadd.f32 %v297_v52, %v158_v53  ;;  %v369_v55 = vpop.f32.mrb[1].mxu0 }
 0x132   :  { %v162_v56 = vmax.f32 %v159_v54, 0.0 }
 0x134   :  { %403 = vmatmul.mubr.f32.vlgmr.msra.gmra.mrb[0].mxu1 %v162_v56 }
 0x207   :  { %v252_v58 = vpop.f32.mrb[0].mxu1 }
 0x208   :  { %v253_v59 = vadd.f32 %v298_v57, %v252_v58  ;;  %v404_v60 = vpop.f32.mrb[1].mxu1 }
 0x20a   :  { %v256_v62 = vmax.f32 %v253_v59, 0.0 }
 0x20c   :  { %v264_v63 = vmul.f32 %v299_v61, %v256_v62 }
 0x20e   :  { %265 = vadd.xlane.f32.xlu0 %v264_v63 }
 0x29b   :  { %v266_v2 = vpop.xlane.xlu0 %265 }
 0x29c   :  { %v274_v3 = vadd.f32 %v300_v1, %v266_v2 }
 0x29e   :  { %277 = vperm.xlu0 %463, %v274_v3  }
 0x31d   :  { %v278_v4 = vpop.permute.xlu0 %277 }
 0x31e   :  { %280 = vst [vmem:[#allocation9] sm:$0xff] %v278_v4 }
 0x31f   :  { %541 = shalt.err (!%p538_p0)
}
 0x320   :  { %s542_s21 = scalar_lea.hbm %s697_s7, 128 }
 0x321   :  { %p543_p1 = scmp.ne.s32.totalorder %s697_s7, %s542_s21  ;;  %p546_p2 = scmp.lt.u32.totalorder %s542_s21, %s697_s7 }
 0x323   :  { %p548_p3 = pnand %p546_p2, %p543_p1 }
 0x325   :  { %551 = shalt.err (!%p548_p3)
}
 0x326   :  { %290 = dma.vmem_to_hbm [thread:$0]  %s288_s19, 128, %s697_s7, [#allocation5]  }
 0x327   :  { %556 = dma.done.wait [#allocation5], 128  }
 0x328   :  { %557 = vsyncadd [#allocation5], 4294967168 }
 0x329   :  { %294 = vsyncpa [#allocation4], 1 }
 0x32a   :  { %295 = vsyncpa [#allocation7], 1 }
 0x32b   :  { %296 = vsyncpa [#allocation5], 1 }

</bundles_post_ra>
